<compile_context>
chip_gen: v7x
topology: tpu7x:2x2x1
jax: 0.10.0
libtpu: 0.0.40
codegen_flags: <defaults>
</compile_context>

<pallas_src>
import jax
import jax.numpy as jnp
from jax import lax
from jax.experimental import pallas as pl
from jax.experimental.pallas import tpu as pltpu


def _flash_spatial_attention_kernel(
    xq_ref,      # (1, C, tq)  query-side x tile (also the residual)
    xkv_ref,     # (1, C, tk)  key/value-side x tile
    wq_ref,      # (C, C)      Wq   (q = Wq @ x)
    bq_ref,      # (C, 1)
    wkv_ref,     # (2C, C)     [Wk; Wv] fused
    bkv_ref,     # (2C, 1)     [bk; bv]
    gamma_ref,   # (1,)        scalar, in SMEM
    o_ref,       # (1, C, tq)
    q_scr,       # (C, tq) bf16   cached Q tile
    m_scr,       # (1, tq) f32    running row max
    l_scr,       # (1, tq) f32    running softmax denominator
    acc_scr,     # (C, tq) f32    running (unnormalized) output
):
    c = wq_ref.shape[0]
    kv = pl.program_id(2)

    # --- first kv step for this (batch, q-tile): project Q once, reset state.
    @pl.when(kv == 0)
    def _():
        xq = xq_ref[0].astype(jnp.bfloat16)                              # (C, tq)
        q = jnp.dot(wq_ref[...].astype(jnp.bfloat16), xq,
                    preferred_element_type=jnp.float32) + bq_ref[...]
        q_scr[...] = q.astype(jnp.bfloat16)
        m_scr[...] = jnp.full_like(m_scr, -jnp.inf)
        l_scr[...] = jnp.zeros_like(l_scr)
        acc_scr[...] = jnp.zeros_like(acc_scr)

    # --- fused K|V projection of the current kv tile: one MXU issue.
    xkv = xkv_ref[0].astype(jnp.bfloat16)                                # (C, tk)
    kvp = jnp.dot(wkv_ref[...].astype(jnp.bfloat16), xkv,
                  preferred_element_type=jnp.float32) + bkv_ref[...]     # (2C, tk)
    k = kvp[:c].astype(jnp.bfloat16)                                     # (C, tk)
    v = kvp[c:].astype(jnp.bfloat16)                                     # (C, tk)

    # --- scores s[j, i] = <k_j, q_i>; contraction over C with the transpose
    #     folded into dot_general (no explicit k.T / VMEM relayout).
    s = lax.dot_general(k, q_scr[...],
                        dimension_numbers=(((0,), (0,)), ((), ())),
                        preferred_element_type=jnp.float32)              # (tk, tq)

    # --- online softmax over the key axis (axis 0); state is lane-oriented.
    m_prev = m_scr[...]                                                  # (1, tq)
    m_new = jnp.maximum(m_prev, jnp.max(s, axis=0, keepdims=True))       # (1, tq)
    alpha = jnp.exp(m_prev - m_new)                                      # (1, tq)
    p = jnp.exp(s - m_new)                                               # (tk, tq)
    l_scr[...] = alpha * l_scr[...] + jnp.sum(p, axis=0, keepdims=True)
    pv = jnp.dot(v, p.astype(jnp.bfloat16),
                 preferred_element_type=jnp.float32)                     # (C, tq)
    acc_scr[...] = alpha * acc_scr[...] + pv
    m_scr[...] = m_new

    # --- last kv step: deferred normalization + gamma * out + residual.
    @pl.when(kv == pl.num_programs(2) - 1)
    def _():
        gamma = gamma_ref[0]
        inv_l = pl.reciprocal(l_scr[...], approx=True)                   # EUP, (1, tq)
        out = gamma * (acc_scr[...] * inv_l) + xq_ref[0]
        o_ref[0] = out.astype(o_ref.dtype)


def spatial_attention(x_nchw, wq, bq, wk, bk, wv, bv, gamma, *, tq=128, tk=128):
    """x_nchw: (B, C, H, W); conv weights: (C, C, 1, 1); biases: (C,); gamma: (1,)."""
    B, C, H, W = x_nchw.shape
    N = H * W
    tq = min(tq, N)
    tk = min(tk, N)
    assert N % tq == 0 and N % tk == 0, "H*W must be a multiple of the tile size"

    # Native NCHW-flattened layout: (B, C, N), spatial on the lane axis.
    x = x_nchw.reshape(B, C, N)

    # 1x1 conv weights (Cout, Cin, 1, 1) -> (Cout, Cin); fuse K and V.
    wq2 = wq[:, :, 0, 0]                                                 # (C, C)
    wkv = jnp.concatenate([wk[:, :, 0, 0], wv[:, :, 0, 0]], axis=0)      # (2C, C)
    bq2 = bq.reshape(C, 1)
    bkv = jnp.concatenate([bk, bv], axis=0).reshape(2 * C, 1)

    grid = (B, N // tq, N // tk)
    const = lambda b, qi, ki: (0, 0)
    # NOTE: for large C (e.g. 512+), consider pipeline_mode=pl.Buffered(1) on the
    # constant weight specs to avoid pointless double-buffering under v7x's 64 MiB
    # VMEM, and re-budget tq/tk against 64 MiB physical (scores + acc + x tiles).

    out = pl.pallas_call(
        _flash_spatial_attention_kernel,
        out_shape=jax.ShapeDtypeStruct((B, C, N), x.dtype),
        grid_spec=pltpu.PrefetchScalarGridSpec(
            num_scalar_prefetch=0,
            grid=grid,
            in_specs=[
                pl.BlockSpec((1, C, tq), lambda b, qi, ki: (b, 0, qi)),   # x (query side)
                pl.BlockSpec((1, C, tk), lambda b, qi, ki: (b, 0, ki)),   # x (key/value side)
                pl.BlockSpec((C, C), const),                              # Wq
                pl.BlockSpec((C, 1), const),                              # bq
                pl.BlockSpec((2 * C, C), const),                          # [Wk; Wv]
                pl.BlockSpec((2 * C, 1), const),                          # [bk; bv]
                pl.BlockSpec(memory_space=pltpu.MemorySpace.SMEM),        # gamma (scalar path)
            ],
            out_specs=pl.BlockSpec((1, C, tq), lambda b, qi, ki: (b, 0, qi)),
            scratch_shapes=[
                pltpu.VMEM((C, tq), jnp.bfloat16),   # cached Q tile
                pltpu.VMEM((1, tq), jnp.float32),    # running max
                pltpu.VMEM((1, tq), jnp.float32),    # running denom
                pltpu.VMEM((C, tq), jnp.float32),    # running output
            ],
        ),
        compiler_params=pltpu.CompilerParams(
            # batch / q-tile axes shard across TensorCores (v7x megacore);
            # the kv axis carries the online-softmax state -> sequential.
            dimension_semantics=("parallel", "parallel", "arbitrary"),
            # Explicit scoped-VMEM budget: above the 16/32 MiB defaults,
            # below v7x's 64 MiB physical with headroom.
            vmem_limit_bytes=48 * 1024 * 1024,
        ),
    )(x, x, wq2, bq2, wkv, bkv, gamma.reshape(1))

    return out.reshape(B, C, H, W)


def reference_forward(x, wq, bq, wk, bk, wv, bv, gamma):
    """Plain-JAX replica of the PyTorch forward (NCHW) for verification."""
    B, C, H, W = x.shape
    N = H * W

    def conv1x1(x, w, b):
        return jnp.einsum('bchw,oc->bohw', x, w[:, :, 0, 0]) + b[None, :, None, None]

    q = conv1x1(x, wq, bq).reshape(B, C, N)
    k = conv1x1(x, wk, bk).reshape(B, C, N)
    v = conv1x1(x, wv, bv).reshape(B, C, N)
    energy = jnp.einsum('bci,bcj->bij', q, k)            # (B, N, N): i=query, j=key
    attention = jax.nn.softmax(energy, axis=-1)
    out = jnp.einsum('bcj,bij->bci', v, attention)       # (B, C, N)
    return (gamma[0] * out + x.reshape(B, C, N)).reshape(B, C, H, W)


def kaiming_uniform(key, cout, cin):
    # nn.init.kaiming_uniform_ default: bound = sqrt(6 / fan_in)
    bound = jnp.sqrt(6.0 / cin)
    return jax.random.uniform(key, (cout, cin, 1, 1), jnp.float32, -bound, bound)


def _to_bf16_grid(a):
    # Round test inputs onto the bf16 grid so the kernel's bf16 MXU feeds of the
    # raw inputs are lossless and the fp32-reference comparison only sees the
    # (documented) bf16 rounding of the Q/K/V/P intermediates.
    return a.astype(jnp.bfloat16).astype(jnp.float32)


if __name__ == "__main__":
    B, C, H, W = 2, 8, 16, 16            # N = H*W = 256 -> grid (2, 2, 2) of 128-wide tiles
    key = jax.random.PRNGKey(0)
    kx, kq, kk, kv_key = jax.random.split(key, 4)

    x = _to_bf16_grid(jax.random.normal(kx, (B, C, H, W), jnp.float32))
    wq = _to_bf16_grid(kaiming_uniform(kq, C, C))
    wk = _to_bf16_grid(kaiming_uniform(kk, C, C))
    wv = _to_bf16_grid(kaiming_uniform(kv_key, C, C))
    bq = jnp.zeros((C,), jnp.float32)
    bk = jnp.zeros((C,), jnp.float32)
    bv = jnp.zeros((C,), jnp.float32)
    # The module initializes gamma to 0 (out == x); use a nonzero value so the
    # attention path is actually exercised/verified.
    gamma = jnp.array([0.5], jnp.float32)

    out = spatial_attention(x, wq, bq, wk, bk, wv, bv, gamma)
    jax.block_until_ready(out)

    ref = reference_forward(x, wq, bq, wk, bk, wv, bv, gamma)
    assert out.shape == (B, C, H, W)
    # bf16 MXU operands (f32 accumulation) + approx reciprocal -> small drift.
    assert jnp.allclose(out, ref, atol=5e-2, rtol=5e-2), (
        "mismatch vs reference: max abs diff = "
        f"{float(jnp.max(jnp.abs(out - ref)))}")

    print("KERNEL_OK")
</pallas_src>

<mosaic_0001>
module attributes {stable_mosaic.version = 11 : i64} {
  func.func @_flash_spatial_attention_kernel(%arg0: i32, %arg1: i32, %arg2: i32, %arg3: memref<1x8x128xf32, #tpu.memory_space<vmem>>, %arg4: memref<1x8x128xf32, #tpu.memory_space<vmem>>, %arg5: memref<8x8xf32, #tpu.memory_space<vmem>>, %arg6: memref<8x1xf32, #tpu.memory_space<vmem>>, %arg7: memref<16x8xf32, #tpu.memory_space<vmem>>, %arg8: memref<16x1xf32, #tpu.memory_space<vmem>>, %arg9: memref<1xf32, #tpu.memory_space<smem>>, %arg10: memref<1x8x128xf32, #tpu.memory_space<vmem>>, %arg11: memref<8x128xbf16, #tpu.memory_space<vmem>>, %arg12: memref<1x128xf32, #tpu.memory_space<vmem>>, %arg13: memref<1x128xf32, #tpu.memory_space<vmem>>, %arg14: memref<8x128xf32, #tpu.memory_space<vmem>>) attributes {dimension_semantics = [#tpu.dimension_semantics<parallel>, #tpu.dimension_semantics<parallel>, #tpu.dimension_semantics<arbitrary>], iteration_bounds = array<i64: 2, 2, 2>, scalar_prefetch = 0 : i64, scratch_operands = 4 : i64, tpu.core_type = #tpu.core_type<tc>, window_params = [{transform_indices = @transform_0, window_bounds = array<i64: 1, 8, 128>}, {transform_indices = @transform_1, window_bounds = array<i64: 1, 8, 128>}, {pipeline_mode = #tpu.pipeline_mode<synchronous>, transform_indices = @transform_2, window_bounds = array<i64: 8, 8>}, {pipeline_mode = #tpu.pipeline_mode<synchronous>, transform_indices = @transform_3, window_bounds = array<i64: 8, 1>}, {pipeline_mode = #tpu.pipeline_mode<synchronous>, transform_indices = @transform_4, window_bounds = array<i64: 16, 8>}, {pipeline_mode = #tpu.pipeline_mode<synchronous>, transform_indices = @transform_5, window_bounds = array<i64: 16, 1>}, {transform_indices = @transform_6, window_bounds = array<i64: 1>}, {transform_indices = @transform_7, window_bounds = array<i64: 1, 8, 128>}]} {
    %c0_i32 = arith.constant 0 : i32
    %0 = arith.cmpi eq, %arg2, %c0_i32 : i32
    %1 = arith.extui %0 : i1 to i32
    %c0_i32_0 = arith.constant 0 : i32
    %2 = arith.cmpi ne, %1, %c0_i32_0 : i32
    scf.if %2 {
      %c0_26 = arith.constant 0 : index
      %c0_27 = arith.constant 0 : index
      %c0_28 = arith.constant 0 : index
      %44 = vector.load %arg3[%c0_26, %c0_27, %c0_28] : memref<1x8x128xf32, #tpu.memory_space<vmem>>, vector<1x8x128xf32>
      %45 = vector.shape_cast %44 : vector<1x8x128xf32> to vector<8x128xf32>
      %46 = arith.truncf %45 : vector<8x128xf32> to vector<8x128xbf16>
      %c0_29 = arith.constant 0 : index
      %c0_30 = arith.constant 0 : index
      %47 = vector.load %arg5[%c0_29, %c0_30] : memref<8x8xf32, #tpu.memory_space<vmem>>, vector<8x8xf32>
      %48 = arith.truncf %47 : vector<8x8xf32> to vector<8x8xbf16>
      %cst_31 = arith.constant dense<0.000000e+00> : vector<8x128xf32>
      %49 = tpu.matmul %48, %46, %cst_31 {dimension_numbers = #tpu.dot_dimension_numbers<[1], [0], [0], [1], [0, 0, 1, 1], [], []>} : vector<8x8xbf16>, vector<8x128xbf16>, vector<8x128xf32> -> vector<8x128xf32>
      %c0_32 = arith.constant 0 : index
      %c0_33 = arith.constant 0 : index
      %50 = vector.load %arg6[%c0_32, %c0_33] : memref<8x1xf32, #tpu.memory_space<vmem>>, vector<8x1xf32>
      %51 = vector.broadcast %50 : vector<8x1xf32> to vector<8x128xf32>
      %52 = arith.addf %49, %51 : vector<8x128xf32>
      %53 = arith.truncf %52 : vector<8x128xf32> to vector<8x128xbf16>
      %c0_34 = arith.constant 0 : index
      %c0_35 = arith.constant 0 : index
      %54 = vector.load %arg11[%c0_34, %c0_35] : memref<8x128xbf16, #tpu.memory_space<vmem>>, vector<8x128xbf16>
      tpu.vector_store %arg11[%c0_34, %c0_35], %53 {strides = array<i32>} : memref<8x128xbf16, #tpu.memory_space<vmem>>, vector<8x128xbf16>,
      %cst_36 = arith.constant 0xFF800000 : f32
      %55 = vector.broadcast %cst_36 : f32 to vector<1x128xf32>
      %c0_37 = arith.constant 0 : index
      %c0_38 = arith.constant 0 : index
      %56 = vector.load %arg12[%c0_37, %c0_38] : memref<1x128xf32, #tpu.memory_space<vmem>>, vector<1x128xf32>
      tpu.vector_store %arg12[%c0_37, %c0_38], %55 {strides = array<i32>} : memref<1x128xf32, #tpu.memory_space<vmem>>, vector<1x128xf32>,
      %cst_39 = arith.constant 0.000000e+00 : f32
      %57 = vector.broadcast %cst_39 : f32 to vector<1x128xf32>
      %c0_40 = arith.constant 0 : index
      %c0_41 = arith.constant 0 : index
      %58 = vector.load %arg13[%c0_40, %c0_41] : memref<1x128xf32, #tpu.memory_space<vmem>>, vector<1x128xf32>
      tpu.vector_store %arg13[%c0_40, %c0_41], %57 {strides = array<i32>} : memref<1x128xf32, #tpu.memory_space<vmem>>, vector<1x128xf32>,
      %cst_42 = arith.constant 0.000000e+00 : f32
      %59 = vector.broadcast %cst_42 : f32 to vector<8x128xf32>
      %c0_43 = arith.constant 0 : index
      %c0_44 = arith.constant 0 : index
      %60 = vector.load %arg14[%c0_43, %c0_44] : memref<8x128xf32, #tpu.memory_space<vmem>>, vector<8x128xf32>
      tpu.vector_store %arg14[%c0_43, %c0_44], %59 {strides = array<i32>} : memref<8x128xf32, #tpu.memory_space<vmem>>, vector<8x128xf32>,
    } else {
    }
    %c0 = arith.constant 0 : index
    %c0_1 = arith.constant 0 : index
    %c0_2 = arith.constant 0 : index
    %3 = vector.load %arg4[%c0, %c0_1, %c0_2] : memref<1x8x128xf32, #tpu.memory_space<vmem>>, vector<1x8x128xf32>
    %4 = vector.shape_cast %3 : vector<1x8x128xf32> to vector<8x128xf32>
    %5 = arith.truncf %4 : vector<8x128xf32> to vector<8x128xbf16>
    %c0_3 = arith.constant 0 : index
    %c0_4 = arith.constant 0 : index
    %6 = vector.load %arg7[%c0_3, %c0_4] : memref<16x8xf32, #tpu.memory_space<vmem>>, vector<16x8xf32>
    %7 = arith.truncf %6 : vector<16x8xf32> to vector<16x8xbf16>
    %cst = arith.constant dense<0.000000e+00> : vector<16x128xf32>
    %8 = tpu.matmul %7, %5, %cst {dimension_numbers = #tpu.dot_dimension_numbers<[1], [0], [0], [1], [0, 0, 1, 1], [], []>} : vector<16x8xbf16>, vector<8x128xbf16>, vector<16x128xf32> -> vector<16x128xf32>
    %c0_5 = arith.constant 0 : index
    %c0_6 = arith.constant 0 : index
    %9 = vector.load %arg8[%c0_5, %c0_6] : memref<16x1xf32, #tpu.memory_space<vmem>>, vector<16x1xf32>
    %10 = vector.broadcast %9 : vector<16x1xf32> to vector<16x128xf32>
    %11 = arith.addf %8, %10 : vector<16x128xf32>
    %12 = vector.extract_strided_slice %11 {offsets = [0, 0], sizes = [8, 128], strides = [1, 1]} : vector<16x128xf32> to vector<8x128xf32>
    %13 = arith.truncf %12 : vector<8x128xf32> to vector<8x128xbf16>
    %14 = vector.extract_strided_slice %11 {offsets = [8, 0], sizes = [8, 128], strides = [1, 1]} : vector<16x128xf32> to vector<8x128xf32>
    %15 = arith.truncf %14 : vector<8x128xf32> to vector<8x128xbf16>
    %c0_7 = arith.constant 0 : index
    %c0_8 = arith.constant 0 : index
    %16 = vector.load %arg11[%c0_7, %c0_8] : memref<8x128xbf16, #tpu.memory_space<vmem>>, vector<8x128xbf16>
    %cst_9 = arith.constant dense<0.000000e+00> : vector<128x128xf32>
    %17 = tpu.matmul %13, %16, %cst_9 {dimension_numbers = #tpu.dot_dimension_numbers<[0], [0], [1], [1], [0, 1, 1, 1], [], []>} : vector<8x128xbf16>, vector<8x128xbf16>, vector<128x128xf32> -> vector<128x128xf32>
    %c0_10 = arith.constant 0 : index
    %c0_11 = arith.constant 0 : index
    %18 = vector.load %arg12[%c0_10, %c0_11] : memref<1x128xf32, #tpu.memory_space<vmem>>, vector<1x128xf32>
    %cst_12 = arith.constant dense<0xFF800000> : vector<128xf32>
    %19 = vector.multi_reduction <maximumf>, %17, %cst_12 [0] : vector<128x128xf32> to vector<128xf32>
    %20 = vector.shape_cast %19 : vector<128xf32> to vector<1x128xf32>
    %21 = arith.maximumf %18, %20 : vector<1x128xf32>
    %22 = arith.subf %18, %21 : vector<1x128xf32>
    %23 = math.exp %22 : vector<1x128xf32>
    %24 = vector.broadcast %21 : vector<1x128xf32> to vector<128x128xf32>
    %25 = arith.subf %17, %24 : vector<128x128xf32>
    %26 = math.exp %25 : vector<128x128xf32>
    %c0_13 = arith.constant 0 : index
    %c0_14 = arith.constant 0 : index
    %27 = vector.load %arg13[%c0_13, %c0_14] : memref<1x128xf32, #tpu.memory_space<vmem>>, vector<1x128xf32>
    %28 = arith.mulf %23, %27 : vector<1x128xf32>
    %cst_15 = arith.constant dense<0.000000e+00> : vector<128xf32>
    %29 = vector.multi_reduction <add>, %26, %cst_15 [0] : vector<128x128xf32> to vector<128xf32>
    %30 = vector.shape_cast %29 : vector<128xf32> to vector<1x128xf32>
    %31 = arith.addf %28, %30 : vector<1x128xf32>
    %c0_16 = arith.constant 0 : index
    %c0_17 = arith.constant 0 : index
    %32 = vector.load %arg13[%c0_16, %c0_17] : memref<1x128xf32, #tpu.memory_space<vmem>>, vector<1x128xf32>
    tpu.vector_store %arg13[%c0_16, %c0_17], %31 {strides = array<i32>} : memref<1x128xf32, #tpu.memory_space<vmem>>, vector<1x128xf32>,
    %33 = arith.truncf %26 : vector<128x128xf32> to vector<128x128xbf16>
    %cst_18 = arith.constant dense<0.000000e+00> : vector<8x128xf32>
    %34 = tpu.matmul %15, %33, %cst_18 {dimension_numbers = #tpu.dot_dimension_numbers<[1], [0], [0], [1], [0, 0, 1, 1], [], []>} : vector<8x128xbf16>, vector<128x128xbf16>, vector<8x128xf32> -> vector<8x128xf32>
    %c0_19 = arith.constant 0 : index
    %c0_20 = arith.constant 0 : index
    %35 = vector.load %arg14[%c0_19, %c0_20] : memref<8x128xf32, #tpu.memory_space<vmem>>, vector<8x128xf32>
    %36 = vector.broadcast %23 : vector<1x128xf32> to vector<8x128xf32>
    %37 = arith.mulf %36, %35 : vector<8x128xf32>
    %38 = arith.addf %37, %34 : vector<8x128xf32>
    %c0_21 = arith.constant 0 : index
    %c0_22 = arith.constant 0 : index
    %39 = vector.load %arg14[%c0_21, %c0_22] : memref<8x128xf32, #tpu.memory_space<vmem>>, vector<8x128xf32>
    tpu.vector_store %arg14[%c0_21, %c0_22], %38 {strides = array<i32>} : memref<8x128xf32, #tpu.memory_space<vmem>>, vector<8x128xf32>,
    %c0_23 = arith.constant 0 : index
    %c0_24 = arith.constant 0 : index
    %40 = vector.load %arg12[%c0_23, %c0_24] : memref<1x128xf32, #tpu.memory_space<vmem>>, vector<1x128xf32>
    tpu.vector_store %arg12[%c0_23, %c0_24], %21 {strides = array<i32>} : memref<1x128xf32, #tpu.memory_space<vmem>>, vector<1x128xf32>,
    %c1_i32 = arith.constant 1 : i32
    %41 = arith.cmpi eq, %arg2, %c1_i32 : i32
    %42 = arith.extui %41 : i1 to i32
    %c0_i32_25 = arith.constant 0 : i32
    %43 = arith.cmpi ne, %42, %c0_i32_25 : i32
    scf.if %43 {
      %c0_26 = arith.constant 0 : index
      %44 = memref.load %arg9[%c0_26] : memref<1xf32, #tpu.memory_space<smem>>
      %c0_27 = arith.constant 0 : index
      %c0_28 = arith.constant 0 : index
      %45 = vector.load %arg13[%c0_27, %c0_28] : memref<1x128xf32, #tpu.memory_space<vmem>>, vector<1x128xf32>
      %46 = tpu.reciprocal %45 {approx = true} : vector<1x128xf32> -> vector<1x128xf32>
      %c0_29 = arith.constant 0 : index
      %c0_30 = arith.constant 0 : index
      %47 = vector.load %arg14[%c0_29, %c0_30] : memref<8x128xf32, #tpu.memory_space<vmem>>, vector<8x128xf32>
      %48 = vector.broadcast %46 : vector<1x128xf32> to vector<8x128xf32>
      %49 = arith.mulf %47, %48 : vector<8x128xf32>
      %50 = vector.broadcast %44 : f32 to vector<8x128xf32>
      %51 = arith.mulf %50, %49 : vector<8x128xf32>
      %c0_31 = arith.constant 0 : index
      %c0_32 = arith.constant 0 : index
      %c0_33 = arith.constant 0 : index
      %52 = vector.load %arg3[%c0_31, %c0_32, %c0_33] : memref<1x8x128xf32, #tpu.memory_space<vmem>>, vector<1x8x128xf32>
      %53 = vector.shape_cast %52 : vector<1x8x128xf32> to vector<8x128xf32>
      %54 = arith.addf %51, %53 : vector<8x128xf32>
      %c0_34 = arith.constant 0 : index
      %c0_35 = arith.constant 0 : index
      %c0_36 = arith.constant 0 : index
      %55 = vector.load %arg10[%c0_34, %c0_35, %c0_36] : memref<1x8x128xf32, #tpu.memory_space<vmem>>, vector<1x8x128xf32>
      %56 = vector.shape_cast %55 : vector<1x8x128xf32> to vector<8x128xf32>
      %57 = vector.shape_cast %54 : vector<8x128xf32> to vector<1x8x128xf32>
      tpu.vector_store %arg10[%c0_34, %c0_35, %c0_36], %57 {strides = array<i32>} : memref<1x8x128xf32, #tpu.memory_space<vmem>>, vector<1x8x128xf32>,
    } else {
    }
    return
  }
  func.func @transform_0(%arg0: i32, %arg1: i32, %arg2: i32) -> (i32, i32, i32) {
    %c0_i32 = arith.constant 0 : i32
    %c0_i32_0 = arith.constant 0 : i32
    return %arg0, %c0_i32, %arg1 : i32, i32, i32
  }
  func.func @transform_1(%arg0: i32, %arg1: i32, %arg2: i32) -> (i32, i32, i32) {
    %c0_i32 = arith.constant 0 : i32
    %c0_i32_0 = arith.constant 0 : i32
    return %arg0, %c0_i32, %arg2 : i32, i32, i32
  }
  func.func @transform_2(%arg0: i32, %arg1: i32, %arg2: i32) -> (i32, i32) {
    %c0_i32 = arith.constant 0 : i32
    %c0_i32_0 = arith.constant 0 : i32
    %c0_i32_1 = arith.constant 0 : i32
    return %c0_i32, %c0_i32_0 : i32, i32
  }
  func.func @transform_3(%arg0: i32, %arg1: i32, %arg2: i32) -> (i32, i32) {
    %c0_i32 = arith.constant 0 : i32
    %c0_i32_0 = arith.constant 0 : i32
    %c0_i32_1 = arith.constant 0 : i32
    return %c0_i32, %c0_i32_0 : i32, i32
  }
  func.func @transform_4(%arg0: i32, %arg1: i32, %arg2: i32) -> (i32, i32) {
    %c0_i32 = arith.constant 0 : i32
    %c0_i32_0 = arith.constant 0 : i32
    %c0_i32_1 = arith.constant 0 : i32
    return %c0_i32, %c0_i32_0 : i32, i32
  }
  func.func @transform_5(%arg0: i32, %arg1: i32, %arg2: i32) -> (i32, i32) {
    %c0_i32 = arith.constant 0 : i32
    %c0_i32_0 = arith.constant 0 : i32
    %c0_i32_1 = arith.constant 0 : i32
    return %c0_i32, %c0_i32_0 : i32, i32
  }
  func.func @transform_6(%arg0: i32, %arg1: i32, %arg2: i32) -> i32 {
    %c0_i32 = arith.constant 0 : i32
    %c0_i32_0 = arith.constant 0 : i32
    return %c0_i32 : i32
  }
  func.func @transform_7(%arg0: i32, %arg1: i32, %arg2: i32) -> (i32, i32, i32) {
    %c0_i32 = arith.constant 0 : i32
    %c0_i32_0 = arith.constant 0 : i32
    return %arg0, %c0_i32, %arg1 : i32, i32, i32
  }
}

</mosaic_0001>

<bundles_post_ra>
// kernel: tpu_custom_call.1
= control target key start
LH: loop header
LB: loop body
LE: loop exit
PB: predicated region body
PF: predicated region fallthrough
CT: control target
= control target key end

     0   :  { %s1767_s0 = inlined_call_operand.vmem [shape: f32[2,8,256], index: 0, kind: input, shape index: {}]   ;;  %s1768_s1 = inlined_call_operand.hbm [shape: f32[2,8,256], index: 1, kind: input, shape index: {}]   ;;  %s1769_s2 = inlined_call_operand.vmem [shape: f32[8,8], index: 2, kind: input, shape index: {}]   ;;  %s1770_s3 = inlined_call_operand.vmem [shape: f32[8,1], index: 3, kind: input, shape index: {}]   ;;  %s1771_s4 = inlined_call_operand.vmem [shape: f32[16,8], index: 4, kind: input, shape index: {}]   ;;  %s1772_s5 = inlined_call_operand.vmem [shape: f32[16,1], index: 5, kind: input, shape index: {}]   ;;  %s1773_s6 = inlined_call_operand.<no memory space> [shape: f32[1], index: 6, kind: input, shape index: {}]   ;;  %s1774_s7 = inlined_call_operand.hbm [shape: f32[2,8,256], index: 7, kind: output, shape index: {}]  }
   0x1   :  { %1787 = sst [smem:[#allocation19_spill]] %s1767_s0 }
   0x2   :  { %1788 = sst [smem:[#allocation20_spill]] %s1771_s4 }
   0x3   :  { %1789 = sst [smem:[#allocation21_spill]] %s1772_s5 }
   0x4   :  { %1790 = sst [smem:[#allocation22_spill]] %s1774_s7 }
   0x5   :  { %12 = sst [smem:[#allocation6]] %s1773_s6 }
   0x6   :  { %13 = vsyncpa [#allocation8], 0 }
   0x7   :  { %15 = vsyncpa [#allocation8 + $0x1], 0 }
   0x8   :  { %16 = vsyncpa [#allocation9], 0 }
   0x9   :  { %18 = vsyncpa [#allocation9 + $0x1], 0  ;;  %s1425_s26 = smov 0   ;;  %s1427_s27 = smov 0  }
   0xa   :  { %s1429_s28 = smov 0   ;;  %s1431_s29 = smov 0  }
   0xb   :  { %s1433_s30 = smov 0   ;;  %s1435_s8 = smov 0  }
   0xc   :  { %s1437_s9 = smov 0   ;;  %s1439_s10 = smov 0  }
   0xd   :  { %s1441_s6 = smov 0   ;;  %s1443_s11 = smov 0  }
   0xe   :  { %s1445_s12 = smov 0   ;;  %s1447_s13 = smov 0  }
   0xf   :  { %s1449_s14 = smov 0  }
  0x10 LB: > { %1791 = sst [smem:[#allocation13_spill]] %s1323_s26  ;;  %s937_s15 = sadd.s32 4294967295, %s1371_s14   ;;  %s1371_s14 = sphi %s1449_s14, %s24_s14   ;;  %s1367_s13 = sphi %s1447_s13, %s1829_s13   ;;  %s1363_s12 = sphi %s1445_s12, %s1817_s12   ;;  %s1359_s11 = sphi %s1443_s11, %s1828_s11   ;;  %s1355_s6 = sphi %s1441_s6, %s1827_s6   ;;  %s1351_s10 = sphi %s1439_s10, %s1815_s10   ;;  %s1347_s9 = sphi %s1437_s9, %s1826_s9   ;;  %s1343_s8 = sphi %s1435_s8, %s1825_s8   ;;  %s1339_s30 = sphi %s1433_s30, %s1824_s30   ;;  %s1335_s29 = sphi %s1431_s29, %s1823_s29   ;;  %s1331_s28 = sphi %s1429_s28, %s1822_s28   ;;  %s1327_s27 = sphi %s1427_s27, %s1821_s27   ;;  %s1323_s26 = sphi %s1425_s26, %s1820_s26  }
  0x11   : > { %1792 = sst [smem:[#allocation14_spill]] %s1363_s12  ;;  %s938_s16 = sadd.s32 4294967294, %s1371_s14  }
  0x12   : > { %s36_s17 = sadd.s32 1, %s1359_s11  ;;  %s39_s18 = sadd.s32 1, %s1363_s12 }
  0x13   : > { %p37_p0 = scmp.ge.s32.totalorder %s36_s17, 2  ;;  %s43_s19 = sadd.s32 1, %s1367_s13 }
  0x14   : > { %s80_s20 = sadd.s32 1, %s1343_s8  ;;  %p87_p1 = scmp.ne.s32.totalorder %s1343_s8, %s1339_s30 }
  0x15   : > { %s1831_s17 = smov (%p37_p0, %s36_s17), 0  ;;  %s1833_s18 = smov (!%p37_p0, %s39_s18), %s1363_s12 }
  0x16   : > { %1793 = sst [smem:[#allocation15_spill]] %s1831_s17  ;;  %s76_s21 = ssub.s32 %s1359_s11, %s1831_s17 }
  0x17   : > { %p88_p2 = scmp.eq.s32.totalorder %s1371_s14, 0  ;;  %p41_p3 = scmp.ge.s32.totalorder %s1833_s18, 2 }
  0x18   : > { %p93_p4 = scmp.ne.s32.totalorder %s1339_s30, %s1335_s29  ;;  %p94_p6 = scmp.eq.s32.totalorder %s937_s15, 0 }
  0x19   : > { %p1503_p5 = por %p88_p2, %p87_p1  ;;  %s1835_s18 = smov (%p41_p3, %s1833_s18), 0 }
  0x1a   : > { %1795 = sst [smem:[#allocation16_spill]] %s1835_s18  ;;  %s1837_s19 = smov (!%p41_p3, %s43_s19), %s1367_s13 }
  0x1b   : > { %p1510_p7 = por %p94_p6, %p93_p4  ;;  %s209_s24 = ssub.s32 %s1363_s12, %s1835_s18 }
  0x1c   : > { %p45_p8 = scmp.ge.s32.totalorder %s1837_s19, 2  ;;  %s213_s25 = sadd.s32 1, %s1331_s28 }
  0x1d   : > { %p223_p9 = scmp.ne.s32.totalorder %s1331_s28, %s1327_s27  ;;  %p224_p10 = scmp.eq.s32.totalorder %s937_s15, 7 }
  0x1e   : > { %s1839_s19 = smov (%p45_p8, %s1837_s19), 0  ;;  %p229_p12 = scmp.ne.s32.totalorder %s1327_s27, %s1323_s26 }
  0x1f   : > { %1797 = sst [smem:[#allocation17_spill]] %s1839_s19  ;;  %p1521_p11 = por %p224_p10, %p223_p9 }
  0x20   : > { %s75_s17 = ssub.s32 %s1367_s13, %s1839_s19  ;;  %p230_p13 = scmp.eq.s32.totalorder %s938_s16, 7 }
  0x21   : > { %s1798_s29 = scalar_select %p1521_p11, 1, 0 }
  0x22   : > { %s77_s18 = sor.u32 %s76_s21, %s75_s17  ;;  %s210_s12 = sor.u32 %s209_s24, %s75_s17 }
  0x23   : > { %1799 = sst [smem:[#allocation18_spill]] %s1798_s29  ;;  %p78_p0 = scmp.eq.s32.totalorder %s77_s18, 0 }
  0x24   : > { %p211_p1 = scmp.eq.s32.totalorder %s210_s12, 0  ;;  %p1529_p2 = por %p230_p13, %p229_p12 }
  0x25   : > { %s1534_s7 = scalar_select %p78_p0, %s1343_s8, %s80_s20  }
  0x26   : > { %s1800_s15 = scalar_select %p1529_p2, 1, 0 }
  0x27   : > { %s1537_s5 = scalar_select %p211_p1, %s1331_s28, %s213_s25  }
  0x28   : > { %p1051_p3 = scmp.lt.s32.totalorder %s1371_s14, 8  ;;  %s276_s29 = sand.u32 1, %s1343_s8  }
  0x29   : > { %s941_s26 = sshll.u32 %s276_s29, 3  ;;  %s942_s19 = sshll.u32 %s1367_s13, 1 }
  0x2a   : > { %s285_s16 = sadd.s32 %s1359_s11, %s942_s19  ;;  %s280_s21 = scalar_lea.vmem [#allocation7], %s941_s26 }
  0x2b   : > { %s289_s17 = sshll.u32 %s280_s21, 4  ;;  %s943_s24 = sshll.u32 %s285_s16, 7  ;;  %s1543_s17 = int_to_ptr.vmem [resolvable:$true] %s289_s17 }
  0x2c   : > { %s1548_s4 = scalar_lea.hbm %s1768_s1, %s943_s24  ;;  %p1552_p4 = pnand %p1051_p3, %p1503_p5 }
  0x2d   : > { %s277_s26 = scalar_lea.sflag [#allocation8], %s276_s29  ;;  %s1203_s19 = scalar_lea.hbm %s1548_s4, 128 }
  0x2e   : > { %p1204_p9 = scmp.ne.s32.totalorder %s1548_s4, %s1203_s19  ;;  %p1205_p10 = pneg %p1552_p4 }
  0x2f   : > { %s1208_s16 = scalar_lea.hbm %s1768_s1, 512  ;;  %p1209_p5 = scmp.lt.u32.totalorder %s1548_s4, %s1768_s1 }
  0x30   : > { %p1206_p12 = pnand %p1205_p10, %p1204_p9  ;;  %p1210_p0 = scmp.lt.u32.totalorder %s1208_s16, %s1203_s19 }
  0x31   : > { %p1212_p3 = scmp.lt.u32.totalorder %s1203_s19, %s1548_s4 }
  0x32   : > { %p1207_p13 = pneg %p1206_p12  ;;  %p1211_p1 = por %p1210_p0, %p1209_p5 }
  0x34   : > { %p1213_p6 = por %p1212_p3, %p1211_p1 }
  0x36   : > { %p1214_p8 = pnand %p1213_p6, %p1207_p13 }
  0x38   : > { %1217 = shalt.err (!%p1214_p8)
}
  0x39   : > { %s1218_s29 = scalar_lea.vmem %s1543_s17, 128  ;;  %s1373_s12 = smov [#allocation7]  }
  0x3a   : > { %p1219_p9 = scmp.ne.s32.totalorder %s1543_s17, %s1218_s29  ;;  %s1223_s18 = sshll.u32 %s1373_s12, 4  ;;  %s1224_s18 = int_to_ptr.vmem [resolvable:$false] %s1223_s18 }
  0x3b   : > { %s1225_s22 = scalar_lea.vmem %s1224_s18, 256  ;;  %p1226_p11 = scmp.lt.s32.totalorder %s1543_s17, %s1224_s18 }
  0x3c   : > { %p1221_p12 = pnand %p1219_p9, %p1205_p10  ;;  %p1227_p5 = scmp.lt.s32.totalorder %s1225_s22, %s1218_s29 }
  0x3e   : > { %p1222_p2 = pneg %p1221_p12  ;;  %p1228_p0 = por %p1227_p5, %p1226_p11 }
  0x40   : > { %p1229_p1 = pnand %p1228_p0, %p1222_p2 }
  0x42   : > { %1232 = shalt.err (!%p1229_p1)
}
  0x43   : > { %1046 = dma.hbm_to_vmem [thread:$0]  (!%p1552_p4), %s1548_s4, 128, %s1543_s17, %s277_s26  }
  0x44   : > { %p1802_p6 = scmp.lt.s32.totalorder %s1371_s14, 9  ;;  %p1803_p8 = scmp.ge.s32.totalorder %s1371_s14, 1 }
  0x46   : > { %p295_p10 = pnand %p1803_p8, %p1802_p6 }
  0x47   : > { %s300_s19 = sand.u32 (!%p295_p10), 1, %s1339_s30  }
  0x48   : > { %298 = sbr.rel (%p295_p10) target bundleno = 1217 (0x4c1), region = 48  ;;  %s1588_s25 = sshll.u32 (!%p295_p10), %s300_s19, 3 }
  0x49   : > { %s301_s16 = scalar_lea.sflag (!%p295_p10), [#allocation8], %s300_s19  ;;  %s304_s21 = scalar_lea.vmem (!%p295_p10), [#allocation7], %s1588_s25 }
  0x4f   : > { %1314 = dma.done.wait (%p1510_p7), %s301_s16, 128  }
  0x50   : > { %1316 = vsyncadd (%p1510_p7), %s301_s16, 4294967168  ;;  %s1786_s4 = sand.u32 1, %s1327_s27   ;;  %p343_p11 = scmp.lt.s32.totalorder %s1355_s6, 1 }
  0x51   : > { %s1599_s17 = sshll.u32 %s1786_s4, 3  ;;  %p345_p2 = scmp.lt.s32.totalorder %s1351_s10, 1 }
  0x52   : > { %s344_s20 = scalar_select %p343_p11, %s1355_s6, 1 }
  0x53   : > { %s346_s26 = scalar_select %p345_p2, %s1351_s10, 1 }
  0x54   : > { %s947_s24 = sshll.u32 %s344_s20, 1  ;;  %s1804_s0 = sld [smem:[#allocation19_spill]] }
  0x55   : > { %s348_s29 = sadd.s32 %s947_s24, %s346_s26  ;;  %s342_s19 = scalar_lea.vmem [#allocation10], %s1599_s17 }
  0x56   : > { %s948_s12 = sshll.u32 %s348_s29, 3  ;;  %p949_p7 = scmp.ne.s32.totalorder %s1347_s9, 0 }
  0x57   : > { %vm370_vm0 = vcmask (!%p949_p7), 1043456   ;;  %v358_v1 = vld [vmem:[%s1769_s2] sm:$0xff] (!%p949_p7)  ;;  %v1374_v2 = vmov (!%p949_p7), 0.0   ;;  %vm1375_vm1 = vmmov (!%p949_p7), 0   ;;  %v1376_v5 = vmov (!%p949_p7), 0  }
  0x58   : > { %355 = sbr.rel (%p949_p7) target bundleno = 315 (0x13b), region = 56  ;;  %988 = vmatprep.subr.bf16.mxu0 (!%p949_p7), %v1374_v2  ;;  %417 = vst [vmem:[#allocation4] sm:$0x1] (!%p949_p7), %v1374_v2  ;;  %418 = vst [vmem:[#allocation5] sm:$0xff] (!%p949_p7), %v1374_v2  ;;  %990 = vmatprep.mubr.msk.bf16.mxu0 (!%p949_p7), %vm1375_vm1, %v1374_v2  ;;  %v360_v4 = vld [vmem:[%s1770_s3] sm:$0xff] (!%p949_p7)  ;;  %v359_v7 = vpack.c.bf16 (!%p949_p7), %v358_v1, %v358_v1  ;;  %vm366_vm2 = vcmask (!%p949_p7), 64512  }
  0x59   : > { %1164 = vset.pattern.permute.xlu0 (!%p949_p7), %v1376_v5  ;;  %v1377_v8 = vmov (!%p949_p7), -inf  }
  0x5a   : > { %s1607_s22 = scalar_lea.vmem %s1804_s0, %s948_s12  ;;  %363 = vperm.xlu0 (!%p949_p7), %1164, %v360_v4   ;;  %416 = vst [vmem:[#allocation3] sm:$0x1] (!%p949_p7), %v1377_v8 }
  0x5b   : > { %v356_v0 = vld [vmem:[%s1607_s22] sm:$0xff] (!%p949_p7) }
  0x5c   : > { %v357_v3 = vpack.c.bf16 (!%p949_p7), %v356_v0, %v356_v0 }
  0x5e   : > { %v372_v6 = vsel (!%p949_p7), %vm370_vm0, %v357_v3, 0 }
  0x5f   : > { %989 = vmatpush3.bf16.msra.mxu0 %v372_v6 }
  0x62   : > { %991 = vmatmul.mubr.msk.bf16.vlgmr.msra.gmra.mrb[0].mxu0 %vm366_vm2, %v359_v7 }
  0xd9   : > { %v364_v9 = vpop.permute.xlu0 %363 }
 0x135   : > { %v408_v10 = vpop.f32.mrb[0].mxu0 }
 0x136   : > { %v409_v11 = vadd.f32 %v408_v10, %v364_v9  ;;  %v992_v12 = vpop.f32.mrb[1].mxu0 }
 0x137   : > { %v411_v13 = vpop.f32.mrb[2].mxu0 }
 0x138   : > { %v414_v14 = vpack.c.bf16 %v409_v11, %v409_v11  ;;  %v993_v15 = vpop.f32.mrb[3].mxu0 }
 0x13a   : > { %415 = vst [vmem:[#allocation2] sm:$0xf] %v414_v14 }
 0x13b PF: > { %v419_v16 = vld [vmem:[%s304_s21] sm:$0xff]  ;;  %vm440_vm3 = vcmask 1043456   ;;  %s1805_s29 = sld [smem:[#allocation20_spill]]  ;;  %v1378_v19 = vmov 0.0   ;;  %vm1379_vm4 = vmmov 0   ;;  %s1807_s25 = sld [smem:[#allocation21_spill]]  ;;  %v655_v12 = vlaneseq }
 0x13c   : > { %994 = vmatprep.subr.bf16.mxu0 %v1378_v19  ;;  %v420_v20 = vpack.c.bf16 %v419_v16, %v419_v16  ;;  %996 = vmatprep.mubr.msk.bf16.mxu0 %vm1379_vm4, %v1378_v19  ;;  %v1380_v23 = vmov 0   ;;  %vm436_vm5 = vcmask 64512   ;;  %p960_p4 = scmp.ne.s32.totalorder %s1347_s9, 1 }
 0x13d   : > { %1165 = vset.pattern.permute.xlu0 %v1380_v23  ;;  %1166 = vset.pattern.permute.xlu1 %v1380_v23  ;;  %v656_v15 = vshrl.u32 %v655_v12, 7  ;;  %s796_s4 = sld [smem:[#allocation6]] (!%p960_p4) }
 0x13e   : > { %v442_v24 = vsel %vm440_vm3, %v420_v20, 0 }
 0x13f   : > { %995 = vmatpush3.bf16.msra.mxu0 %v442_v24  ;;  %v1668_v20 = vsub.s32 0, %v656_v15 }
 0x140   : > { %1018 = vmatprep.subr.bf16.mxu0 %v1378_v19 }
 0x141   : > { %s1806_s23 = smov %s1805_s29  ;;  %v421_v17 = vld [vmem:[%s1805_s29] sm:$0xff]  ;;  %v425_v22 = vld [vmem:[%s1807_s25 + $0x8] sm:$0xff] }
 0x142   : > { %v422_v18 = vld [vmem:[%s1806_s23 + $0x8] sm:$0xff]  ;;  %v424_v21 = vld [vmem:[%s1807_s25] sm:$0xff]  ;;  %433 = vperm.xlu1 %1166, %v425_v22  }
 0x143   : > { %v423_v25 = vpack.c.bf16 %v422_v18, %v421_v17  ;;  %428 = vperm.xlu0 %1165, %v424_v21   ;;  %v487_v26 = vld [vmem:[#allocation2] sm:$0xf]  ;;  %v628_v17 = vld [vmem:[#allocation3] sm:$0x1] }
 0x144   : > { %1038 = vmatprep.subr.msk.bf16.mxu1 %vm440_vm3, %v487_v26  ;;  %v529_v27 = vsel %vm440_vm3, %v487_v26, 0 }
 0x145   : > { %997 = vmatmul.mubr.msk.bf16.vlgmr.msra.gmra.mrb[0].mxu0 %vm436_vm5, %v423_v25  ;;  %1001 = vmatpush3.bf16.msra.mxu1 %v529_v27 }
 0x146   : > { %1034 = vmatprep.mubr.msk.bf16.mxu0 %vm1379_vm4, %v1378_v19 }
 0x1c2   : > { %v429_v28 = vpop.permute.xlu0 %428 }
 0x218   : > { %v478_v29 = vpop.f32.mrb[0].mxu0 }
 0x219   : > { %v479_v30 = vadd.f32 %v478_v29, %v429_v28  ;;  %v998_v31 = vpop.f32.mrb[1].mxu0 }
 0x21a   : > { %v1640_v32 = vpop.f32.mrb[2].mxu0 }
 0x21b   : > { %v485_v33 = vpack.c.bf16 %v479_v30, %v479_v30  ;;  %v999_v34 = vpop.f32.mrb[3].mxu0 }
 0x21d   : > { %488 = vxpose.xlu0.c.b16.start.end [1/1] (short) %v485_v33, 128 }
 0x283   : > { %v496_v35 = vpop.trf.xlu0 }
 0x284   : > { %1002 = vmatprep.mubr.msk.bf16.mxu1 %vm436_vm5, %v496_v35 }
 0x287   : > { %v497_v36 = vpop.trf.xlu0 }
 0x288   : > { %1003 = vmatmul.mubr.msk.bf16.vlgmr.msra.gmra.mrb[0].mxu1 %vm436_vm5, %v497_v36 }
 0x28b   : > { %v498_v37 = vpop.trf.xlu0 }
 0x28c   : > { %1006 = vmatprep.mubr.msk.bf16.mxu1 %vm436_vm5, %v498_v37 }
 0x28f   : > { %v499_v38 = vpop.trf.xlu0 }
 0x290   : > { %1007 = vmatmul.mubr.msk.bf16.gmra.mrb[4].mxu1 %vm436_vm5, %v499_v38 }
 0x293   : > { %v500_v39 = vpop.trf.xlu0 }
 0x294   : > { %1010 = vmatprep.mubr.msk.bf16.mxu1 %vm436_vm5, %v500_v39 }
 0x297   : > { %v501_v40 = vpop.trf.xlu0 }
 0x298   : > { %1011 = vmatmul.mubr.msk.bf16.gmra.mrb[8].mxu1 %vm436_vm5, %v501_v40 }
 0x29b   : > { %v502_v41 = vpop.trf.xlu0 }
 0x29c   : > { %1014 = vmatprep.mubr.msk.bf16.mxu1 %vm436_vm5, %v502_v41 }
 0x29f   : > { %v503_v42 = vpop.trf.xlu0 }
 0x2a0   : > { %1015 = vmatmul.mubr.msk.bf16.gmra.mrb[12].mxu1 %vm436_vm5, %v503_v42 }
 0x35b   : > { %v1004_v43 = vpop.f32.mrb[0].mxu1 }
 0x35c   : > { %v565_v44 = vpop.f32.mrb[1].mxu1 }
 0x35d   : > { %v1005_v45 = vpop.f32.mrb[2].mxu1 }
 0x35e   : > { %v568_v46 = vpop.f32.mrb[3].mxu1 }
 0x363   : > { %v1650_v47 = vpop.f32.mrb[4].mxu1 }
 0x364   : > { %v631_v48 = vmax.f32 %v1004_v43, %v1650_v47  ;;  %v581_v49 = vpop.f32.mrb[5].mxu1 }
 0x365   : > { %v629_v50 = vmax.f32 %v565_v44, %v581_v49  ;;  %v1653_v51 = vpop.f32.mrb[6].mxu1 }
 0x366   : > { %v632_v52 = vmax.f32 %v1005_v45, %v1653_v51  ;;  %v584_v53 = vpop.f32.mrb[7].mxu1 }
 0x367   : > { %v630_v54 = vmax.f32 %v568_v46, %v584_v53 }
 0x36b   : > { %v1656_v55 = vpop.f32.mrb[8].mxu1 }
 0x36c   : > { %v635_v56 = vmax.f32 %v631_v48, %v1656_v55  ;;  %v597_v57 = vpop.f32.mrb[9].mxu1 }
 0x36d   : > { %v633_v58 = vmax.f32 %v629_v50, %v597_v57  ;;  %v1659_v59 = vpop.f32.mrb[10].mxu1 }
 0x36e   : > { %v636_v60 = vmax.f32 %v632_v52, %v1659_v59  ;;  %v600_v61 = vpop.f32.mrb[11].mxu1 }
 0x36f   : > { %v634_v62 = vmax.f32 %v630_v54, %v600_v61 }
 0x373   : > { %v1662_v63 = vpop.f32.mrb[12].mxu1 }
 0x374   : > { %v639_v0 = vmax.f32 %v635_v56, %v1662_v63  ;;  %v613_v1 = vpop.f32.mrb[13].mxu1 }
 0x375   : > { %v637_v2 = vmax.f32 %v633_v58, %v613_v1  ;;  %v1665_v3 = vpop.f32.mrb[14].mxu1 }
 0x376   : > { %v640_v4 = vmax.f32 %v636_v60, %v1665_v3  ;;  %v616_v5 = vpop.f32.mrb[15].mxu1 }
 0x377   : > { %v638_v6 = vmax.f32 %v634_v62, %v616_v5 }
 0x378   : > { %v642_v7 = vmax.f32 %v639_v0, %v640_v4 }
 0x379   : > { %v641_v8 = vmax.f32 %v637_v2, %v638_v6 }
 0x37b   : > { %v643_v9 = vmax.f32 %v641_v8, %v642_v7 }
 0x37d   : > { %v644_v10 = vrot.slane %v643_v9, 4 }
 0x37f   : > { %v645_v11 = vmax.f32 %v643_v9, %v644_v10 }
 0x381   : > { %v646_v13 = vrot.slane %v645_v11, 2 }
 0x383   : > { %v647_v14 = vmax.f32 %v645_v11, %v646_v13 }
 0x385   : > { %v648_v16 = vrot.slane %v647_v14, 1 }
 0x387   : > { %v649_v18 = vmax.f32 %v647_v14, %v648_v16 }
 0x389   : > { %v650_v21 = vmax.f32 %v628_v17, %v649_v18 }
 0x38b   : > { %v658_v22 = vrot.slane %v650_v21, %v1668_v20  ;;  %791 = vst [vmem:[#allocation3] sm:$0x1] %v650_v21 }
 0x38d   : > { %v660_v23 = vsub.f32 %v565_v44, %v658_v22  ;;  %v661_v24 = vsub.f32 %v568_v46, %v658_v22  ;;  %v662_v25 = vsub.f32 %v1004_v43, %v658_v22  ;;  %v663_v26 = vsub.f32 %v1005_v45, %v658_v22 }
 0x38e   : > { %v664_v27 = vsub.f32 %v581_v49, %v658_v22  ;;  %v665_v28 = vsub.f32 %v584_v53, %v658_v22  ;;  %v666_v29 = vsub.f32 %v1650_v47, %v658_v22  ;;  %v667_v30 = vsub.f32 %v1653_v51, %v658_v22 }
 0x38f   : > { %v668_v31 = vsub.f32 %v597_v57, %v658_v22  ;;  %v669_v33 = vsub.f32 %v600_v61, %v658_v22  ;;  %v670_v34 = vsub.f32 %v1656_v55, %v658_v22  ;;  %v671_v35 = vsub.f32 %v1659_v59, %v658_v22 }
 0x390   : > { %v672_v36 = vsub.f32 %v613_v1, %v658_v22  ;;  %v673_v37 = vsub.f32 %v616_v5, %v658_v22  ;;  %v674_v38 = vsub.f32 %v1662_v63, %v658_v22  ;;  %v675_v39 = vsub.f32 %v1665_v3, %v658_v22 }
 0x391   : > { %v676_v40 = vmul.f32 1.442695, %v660_v23  ;;  %v678_v41 = vmul.f32 1.442695, %v661_v24  ;;  %v680_v42 = vmul.f32 1.442695, %v662_v25  ;;  %v651_v53 = vsub.f32 %v628_v17, %v650_v21 }
 0x392   : > { %v682_v43 = vmul.f32 1.442695, %v663_v26  ;;  %v684_v44 = vmul.f32 1.442695, %v664_v27  ;;  %v686_v45 = vmul.f32 1.442695, %v665_v28 }
 0x393   : > { %1167 = vpow2.f32 %v676_v40  ;;  %v688_v46 = vmul.f32 1.442695, %v666_v29  ;;  %v690_v47 = vmul.f32 1.442695, %v667_v30  ;;  %v692_v48 = vmul.f32 1.442695, %v668_v31 }
 0x394   : > { %1169 = vpow2.f32 %v678_v41  ;;  %v694_v49 = vmul.f32 1.442695, %v669_v33  ;;  %v696_v50 = vmul.f32 1.442695, %v670_v34  ;;  %v698_v51 = vmul.f32 1.442695, %v671_v35  ;;  %v434_v35 = vpop.permute.xlu1 %433 }
 0x395   : > { %1171 = vpow2.f32 %v680_v42  ;;  %v700_v52 = vmul.f32 1.442695, %v672_v36  ;;  %v702_v54 = vmul.f32 1.442695, %v673_v37  ;;  %v704_v56 = vmul.f32 1.442695, %v674_v38 }
 0x396   : > { %1173 = vpow2.f32 %v682_v43  ;;  %v706_v58 = vmul.f32 1.442695, %v675_v39  ;;  %v652_v62 = vmul.f32 1.442695, %v651_v53  ;;  %v482_v38 = vadd.f32 %v1640_v32, %v434_v35 }
 0x397   : > { %1175 = vpow2.f32 %v684_v44 }
 0x398   : > { %1177 = vpow2.f32 %v686_v45  ;;  %v486_v41 = vpack.c.bf16 %v482_v38, %v482_v38  ;;  %v708_v45 = vld [vmem:[#allocation4] sm:$0x1] }
 0x399   : > { %1179 = vpow2.f32 %v688_v46 }
 0x39a   : > { %1181 = vpow2.f32 %v690_v47 }
 0x39b   : > { %1183 = vpow2.f32 %v692_v48 }
 0x39c   : > { %1185 = vpow2.f32 %v694_v49 }
 0x39d   : > { %v1168_v55 = vpop.eup %1167  ;;  %1187 = vpow2.f32 %v696_v50  ;;  %v781_v50 = vld [vmem:[#allocation5] sm:$0xff] }
 0x39e   : > { %v1170_v57 = vpop.eup %1169  ;;  %1189 = vpow2.f32 %v698_v51 }
 0x39f   : > { %v1172_v59 = vpop.eup %1171  ;;  %1191 = vpow2.f32 %v700_v52  ;;  %v710_v60 = vadd.f32 %v1170_v57, %v1168_v55  ;;  %v733_v61 = vpack.c.bf16 %v1170_v57, %v1168_v55 }
 0x3a0   : > { %v1174_v63 = vpop.eup %1173  ;;  %1193 = vpow2.f32 %v702_v54 }
 0x3a1   : > { %v1176_v0 = vpop.eup %1175  ;;  %1195 = vpow2.f32 %v704_v56  ;;  %v711_v1 = vadd.f32 %v1172_v59, %v710_v60  ;;  %1019 = vmatpush3.bf16.msra.mxu0 %v733_v61  ;;  %v734_v2 = vpack.c.bf16 %v1174_v63, %v1172_v59  ;;  %v807_v59 = vstv (!%p960_p4), %s796_s4  ;;  %v809_v61 = vld [vmem:[%s1607_s22] sm:$0xff] (!%p960_p4) }
 0x3a2   : > { %v1178_v3 = vpop.eup %1177  ;;  %1197 = vpow2.f32 %v706_v58  ;;  %1020 = vmatprep.subr.bf16.mxu0 %v1378_v19 }
 0x3a3   : > { %v1180_v4 = vpop.eup %1179  ;;  %v712_v5 = vadd.f32 %v1174_v63, %v711_v1  ;;  %v735_v6 = vpack.c.bf16 %v1178_v3, %v1176_v0  ;;  %1199 = vpow2.f32 %v652_v62 }
 0x3a4   : > { %v1182_v7 = vpop.eup %1181 }
 0x3a5   : > { %v1184_v8 = vpop.eup %1183  ;;  %v713_v9 = vadd.f32 %v1176_v0, %v712_v5  ;;  %1021 = vmatpush3.bf16.msra.mxu0 %v734_v2  ;;  %v736_v10 = vpack.c.bf16 %v1182_v7, %v1180_v4 }
 0x3a6   : > { %v1186_v11 = vpop.eup %1185  ;;  %1022 = vmatprep.subr.bf16.mxu0 %v1378_v19 }
 0x3a7   : > { %v1188_v12 = vpop.eup %1187  ;;  %v714_v13 = vadd.f32 %v1178_v3, %v713_v9  ;;  %v737_v14 = vpack.c.bf16 %v1186_v11, %v1184_v8 }
 0x3a8   : > { %v1190_v15 = vpop.eup %1189 }
 0x3a9   : > { %v1192_v16 = vpop.eup %1191  ;;  %v715_v17 = vadd.f32 %v1180_v4, %v714_v13  ;;  %1023 = vmatpush3.bf16.msra.mxu0 %v735_v6  ;;  %v738_v18 = vpack.c.bf16 %v1190_v15, %v1188_v12 }
 0x3aa   : > { %v1194_v21 = vpop.eup %1193  ;;  %1024 = vmatprep.subr.bf16.mxu0 %v1378_v19 }
 0x3ab   : > { %v1196_v22 = vpop.eup %1195  ;;  %v716_v23 = vadd.f32 %v1182_v7, %v715_v17  ;;  %v739_v24 = vpack.c.bf16 %v1194_v21, %v1192_v16 }
 0x3ac   : > { %v1198_v25 = vpop.eup %1197 }
 0x3ad   : > { %v1200_v26 = vpop.eup %1199  ;;  %v717_v27 = vadd.f32 %v1184_v8, %v716_v23  ;;  %1025 = vmatpush3.bf16.msra.mxu0 %v736_v10  ;;  %v740_v28 = vpack.c.bf16 %v1198_v25, %v1196_v22 }
 0x3ae   : > { %1026 = vmatprep.subr.bf16.mxu0 %v1378_v19  ;;  %v786_v29 = vrot.slane %v1200_v26, %v1668_v20  ;;  %v709_v48 = vmul.f32 %v1200_v26, %v708_v45 }
 0x3af   : > { %v718_v30 = vadd.f32 %v1186_v11, %v717_v27 }
 0x3b0   : > { %v788_v51 = vmul.f32 %v786_v29, %v781_v50 }
 0x3b1   : > { %v719_v31 = vadd.f32 %v1188_v12, %v718_v30  ;;  %1027 = vmatpush3.bf16.msra.mxu0 %v737_v14 }
 0x3b2   : > { %1028 = vmatprep.subr.bf16.mxu0 %v1378_v19 }
 0x3b3   : > { %v720_v33 = vadd.f32 %v1190_v15, %v719_v31 }
 0x3b5   : > { %v721_v34 = vadd.f32 %v1192_v16, %v720_v33  ;;  %1029 = vmatpush3.bf16.msra.mxu0 %v738_v18 }
 0x3b6   : > { %1030 = vmatprep.subr.bf16.mxu0 %v1378_v19 }
 0x3b7   : > { %v722_v36 = vadd.f32 %v1194_v21, %v721_v34 }
 0x3b9   : > { %v723_v37 = vadd.f32 %v1196_v22, %v722_v36  ;;  %1031 = vmatpush3.bf16.msra.mxu0 %v739_v24 }
 0x3ba   : > { %1032 = vmatprep.subr.bf16.mxu0 %v1378_v19 }
 0x3bb   : > { %v724_v39 = vadd.f32 %v1198_v25, %v723_v37 }
 0x3bd   : > { %v725_v40 = vrot.slane %v724_v39, 4  ;;  %1033 = vmatpush3.bf16.msra.mxu0 %v740_v28 }
 0x3bf   : > { %v726_v42 = vadd.f32 %v725_v40, %v724_v39 }
 0x3c0   : > { %1035 = vmatmul.mubr.bf16.vlgmr.msra.gmra.mrb[4].mxu0 %v486_v41 }
 0x3c1   : > { %v727_v43 = vrot.slane %v726_v42, 2 }
 0x3c3   : > { %v728_v44 = vadd.f32 %v727_v43, %v726_v42 }
 0x3c5   : > { %v729_v46 = vrot.slane %v728_v44, 1 }
 0x3c7   : > { %v730_v47 = vadd.f32 %v729_v46, %v728_v44 }
 0x3c9   : > { %v731_v49 = vadd.f32 %v730_v47, %v709_v48 }
 0x3cb   : > { %732 = vst [vmem:[#allocation4] sm:$0x1] %v731_v49 }
 0x3d2   : > { %v797_v55 = vld [vmem:[#allocation4] sm:$0x1] (!%p960_p4) }
 0x3d3   : > { %1201 = vrcp.f32 (!%p960_p4), %v797_v55 }
 0x3dd   : > { %v1202_v56 = vpop.eup (!%p960_p4), %1201 }
 0x3de   : > { %v804_v58 = vrot.slane (!%p960_p4), %v1202_v56, %v1668_v20 }
 0x490   : > { %795 = sbr.rel (%p960_p4) target bundleno = 1189 (0x4a5), region = 60 }
 0x493   : > { %v775_v52 = vpop.f32.mrb[4].mxu0 }
 0x494   : > { %v789_v32 = vadd.f32 %v788_v51, %v775_v52  ;;  %v1036_v53 = vpop.f32.mrb[5].mxu0 }
 0x495   : > { %v778_v19 = vpop.f32.mrb[6].mxu0 }
 0x496   : > { %790 = vst [vmem:[#allocation5] sm:$0xff] %v789_v32  ;;  %v1037_v54 = vpop.f32.mrb[7].mxu0 }
 0x49d   : > { %v799_v57 = vld [vmem:[#allocation5] sm:$0xff] }
 0x49e   : > { %v806_v60 = vmul.f32 %v804_v58, %v799_v57 }
 0x4a0   : > { %v808_v62 = vmul.f32 %v807_v59, %v806_v60 }
 0x4a2   : > { %v810_v63 = vadd.f32 %v809_v61, %v808_v62 }
 0x4a4   : > { %811 = vst [vmem:[%s342_s19] sm:$0xff] %v810_v63 }
 0x4a5 PF: > { %s1808_s9 = sld [smem:[#allocation18_spill]]  ;;  %s962_s24 = sshll.u32 %s1355_s6, 1 }
 0x4a6   : > { %s824_s29 = sadd.s32 %s1351_s10, %s962_s24  ;;  %s828_s12 = sshll.u32 %s342_s19, 4  ;;  %s1695_s12 = int_to_ptr.vmem [resolvable:$true] %s828_s12 }
 0x4a7   : > { %s963_s18 = sshll.u32 %s824_s29, 7  ;;  %s1809_s22 = sld [smem:[#allocation22_spill]] }
 0x4a8   : > { %s1810_s26 = sand.u32 1, %s1327_s27   ;;  %s1233_s0 = scalar_lea.vmem %s1695_s12, 128 }
 0x4a9   : > { %s813_s4 = scalar_lea.sflag [#allocation9], %s1810_s26  ;;  %p1234_p13 = scmp.ne.s32.totalorder %s1695_s12, %s1233_s0 }
 0x4aa   : > { %s1381_s10 = smov [#allocation10]  }
 0x4ab   : > { %p1811_p3 = scmp.ne.s32.totalorder %s1808_s9, 0  ;;  %s1237_s6 = sshll.u32 %s1381_s10, 4  ;;  %s1238_s6 = int_to_ptr.vmem [resolvable:$false] %s1237_s6 }
 0x4ac   : > { %s1239_s17 = scalar_lea.vmem %s1238_s6, 256  ;;  %p1240_p5 = scmp.lt.s32.totalorder %s1695_s12, %s1238_s6 }
 0x4ad   : > { %s826_s21 = scalar_lea.hbm %s1809_s22, %s963_s18  ;;  %p1235_p9 = pnand %p1234_p13, %p1811_p3 }
 0x4ae   : > { %p1241_p0 = scmp.lt.s32.totalorder %s1239_s17, %s1233_s0 }
 0x4af   : > { %p1236_p12 = pneg %p1235_p9 }
 0x4b0   : > { %p1242_p1 = por %p1241_p0, %p1240_p5 }
 0x4b2   : > { %p1243_p6 = pnand %p1242_p1, %p1236_p12 }
 0x4b4   : > { %1246 = shalt.err (!%p1243_p6)
}
 0x4b5   : > { %s1247_s19 = scalar_lea.hbm %s826_s21, 128  ;;  %s1251_s18 = scalar_lea.hbm %s1809_s22, 512 }
 0x4b6   : > { %p1248_p8 = scmp.ne.s32.totalorder %s826_s21, %s1247_s19  ;;  %p1252_p2 = scmp.lt.u32.totalorder %s826_s21, %s1809_s22 }
 0x4b7   : > { %p1253_p7 = scmp.lt.u32.totalorder %s1251_s18, %s1247_s19  ;;  %p1255_p13 = scmp.lt.u32.totalorder %s1247_s19, %s826_s21 }
 0x4b8   : > { %p1249_p10 = pnand %p1248_p8, %p1811_p3 }
 0x4b9   : > { %p1254_p4 = por %p1253_p7, %p1252_p2 }
 0x4ba   : > { %p1250_p11 = pneg %p1249_p10 }
 0x4bb   : > { %p1256_p9 = por %p1255_p13, %p1254_p4 }
 0x4bd   : > { %p1257_p12 = pnand %p1256_p9, %p1250_p11 }
 0x4bf   : > { %1260 = shalt.err (!%p1257_p12)
}
 0x4c0   : > { %1041 = dma.vmem_to_hbm [thread:$0]  (%p1811_p3), %s1695_s12, 128, %s826_s21, %s813_s4  }
 0x4c1 PF: > { %s1812_s0 = sld [smem:[#allocation13_spill]]  ;;  %p1052_p5 = scmp.ge.s32.totalorder %s1371_s14, 2 }
 0x4c2   : > { %p1813_p0 = scmp.ne.s32.totalorder %s1800_s15, 0 }
 0x4c4   : > { %p1048_p1 = pnand %p1052_p5, %p1813_p0 }
 0x4c7   : > { %s840_s26 = sand.u32 1, %s1812_s0  }
 0x4c8   : > { %s841_s10 = scalar_lea.sflag [#allocation9], %s840_s26 }
 0x4c9   : > { %1318 = dma.done.wait (!%p1048_p1), %s841_s10, 128  }
 0x4ca   : > { %1320 = vsyncadd (!%p1048_p1), %s841_s10, 4294967168  ;;  %s24_s14 = sadd.s32 1, %s1371_s14   ;;  %s1815_s10 = sld [smem:[#allocation14_spill]] }
 0x4cb   : > { %p1723_p6 = scmp.ge.s32.totalorder %s24_s14, 10   ;;  %s1816_s15 = sld [smem:[#allocation15_spill]] }
 0x4cc   : > { %s1817_s12 = sld [smem:[#allocation16_spill]]  ;;  %s1818_s21 = sld [smem:[#allocation17_spill]] }
 0x4cd   : > { %s1820_s26 = smov %s1327_s27  ;;  %s1821_s27 = smov %s1331_s28 }
 0x4ce   : > { %s1822_s28 = smov %s1537_s5  ;;  %s1823_s29 = smov %s1339_s30 }
 0x4cf   : > { %s1824_s30 = smov %s1343_s8  ;;  %s1825_s8 = smov %s1534_s7 }
 0x4d0   : > { %s1826_s9 = smov %s1359_s11  ;;  %s1827_s6 = smov %s1367_s13 }
 0x4d1   : > { %s1828_s11 = smov %s1816_s15  ;;  %23 = sbr.rel (!%p1723_p6) target bundleno = 16 (0x10), region = 104 }
 0x4d2   : > { %s1829_s13 = smov %s1818_s21 }
 0x4d8   :  { %846 = vsyncpa [#allocation8], 1 }
 0x4d9   :  { %848 = vsyncpa [#allocation8 + $0x1], 1 }
 0x4da   :  { %849 = vsyncpa [#allocation9], 1 }
 0x4db   :  { %851 = vsyncpa [#allocation9 + $0x1], 1 }

</bundles_post_ra>
